<compile_context>
chip_gen: v6e
topology: v6e:2x2x1
jax: 0.10.0
libtpu: 0.0.40
codegen_flags: <defaults>
</compile_context>

<pallas_src>
import jax
import jax.numpy as jnp
from jax.experimental import pallas as pl
from jax.experimental.pallas import tpu as pltpu


def _round_up(x, m):
    return ((x + m - 1) // m) * m


def autoencoder_kernel(x_ref, w1_ref, b1_ref, w2_ref, b2_ref, z_ref, y_ref):
    # Encoder: Linear(D_in -> H) + ReLU.
    # In-kernel bf16 cast of x (VPU work hidden under MXU/DMA slack),
    # f32 accumulation on the MXU.
    x = x_ref[...].astype(jnp.bfloat16)
    h = jnp.dot(x, w1_ref[...], preferred_element_type=jnp.float32)
    z = jnp.maximum(h + b1_ref[...], 0.0)            # bias + ReLU in f32 (VPU)
    z_ref[...] = z.astype(z_ref.dtype)               # bf16 writeback

    # Decoder: Linear(H -> D_in) + Sigmoid.
    y = jnp.dot(z.astype(jnp.bfloat16), w2_ref[...],
                preferred_element_type=jnp.float32)
    # sigmoid(v) == 0.5*tanh(0.5*v) + 0.5: one EUP push instead of exp+recip;
    # the mul/adds ride on idle VALU slots.
    y_ref[...] = (0.5 * jnp.tanh(0.5 * (y + b2_ref[...])) + 0.5).astype(y_ref.dtype)


def autoencoder_forward(x_nchw, w1, b1, w2, b2, *, block_m=512,
                        out_dtype=jnp.bfloat16):
    """x_nchw: [B, C, H, W].  w1: [D_in, H] bf16, w2: [H, D_in] bf16 (pre-cast
    at init time), b1/b2 f32.  Returns (z [B, H], y [B, D_in]) in out_dtype.
    Note: H (latent width) should be a multiple of 128 for lane-dense stores.
    """
    B = x_nchw.shape[0]
    x2d = x_nchw.reshape(B, -1)               # identical to torch .view(B, -1)
    D_in = x2d.shape[1]
    H = w1.shape[1]

    # Weights should already be bf16 (init-time cast); this is a no-op then.
    w1 = w1 if w1.dtype == jnp.bfloat16 else w1.astype(jnp.bfloat16)
    w2 = w2 if w2.dtype == jnp.bfloat16 else w2.astype(jnp.bfloat16)
    b1_2d = b1.reshape(1, H).astype(jnp.float32)
    b2_2d = b2.reshape(1, D_in).astype(jnp.float32)

    # Batch tiling (no jnp.pad: Pallas masks the ragged final block, and these
    # ops are purely row-wise).
    #  * tiny B -> a single full-batch block (a block equal to the full array
    #    dim is legal for any B).
    #  * otherwise aim for >=2 grid steps (feeds both v7x TensorCores) with
    #    tiles <= block_m, rounded to the 8-sublane granule.
    if B < 16:
        TM = B
    else:
        TM = max(8, min(block_m, _round_up(pl.cdiv(B, 2), 8)))
    grid = (pl.cdiv(B, TM),)

    # VMEM working set: f32 x tile + bf16 output tiles double-buffered;
    # weights/biases are single-buffered (Buffered(1), constant index_map) so
    # they are counted once.
    vmem_need = (
        2 * TM * D_in * 4                     # x tile (f32 in, double-buffered)
        + 2 * D_in * H * 2                    # w1 + w2 (bf16, single-buffered)
        + (H + D_in) * 4                      # biases (f32, single-buffered)
        + 2 * (TM * H + TM * D_in) * 2        # z, y tiles (bf16, double-buffered)
        + TM * (H + D_in) * 4                 # f32 intermediates headroom
    )
    compiler_kwargs = dict(dimension_semantics=("parallel",))
    if vmem_need > 16 * 1024 * 1024:
        try:
            phys = pltpu.get_tpu_info().vmem_capacity_bytes
        except Exception:
            phys = 64 * 1024 * 1024           # conservative (v7x per-TC) fallback
        # ~75% of physical per-core VMEM (v5e/v6e 128 MiB, v7x 64 MiB per TC).
        compiler_kwargs["vmem_limit_bytes"] = min(int(vmem_need * 5 // 4),
                                                  int(phys * 3 // 4))
    # TODO(synk): when the resident bf16 weights no longer fit the per-core
    # VMEM budget (threshold is half as large on v7x), add a K/N reduction
    # grid axis with a VMEM f32 accumulator instead of full weight residency.

    cost = pl.CostEstimate(
        flops=4 * B * D_in * H,                       # two matmuls
        transcendentals=B * D_in,                     # one tanh per y element
        bytes_accessed=(B * D_in * 4                  # x read (f32)
                        + 2 * D_in * H * 2            # weights (bf16, one pass)
                        + (H + D_in) * 4              # biases
                        + B * (H + D_in) * 2),        # z + y writeback (bf16)
    )

    const_map = lambda i: (0, 0)
    z, y = pl.pallas_call(
        autoencoder_kernel,
        grid=grid,
        out_shape=(
            jax.ShapeDtypeStruct((B, H), out_dtype),
            jax.ShapeDtypeStruct((B, D_in), out_dtype),
        ),
        in_specs=[
            pl.BlockSpec((TM, D_in), lambda i: (i, 0)),                        # x
            pl.BlockSpec((D_in, H), const_map, pipeline_mode=pl.Buffered(1)),  # w1
            pl.BlockSpec((1, H), const_map, pipeline_mode=pl.Buffered(1)),     # b1
            pl.BlockSpec((H, D_in), const_map, pipeline_mode=pl.Buffered(1)),  # w2
            pl.BlockSpec((1, D_in), const_map, pipeline_mode=pl.Buffered(1)),  # b2
        ],
        out_specs=(
            pl.BlockSpec((TM, H), lambda i: (i, 0)),
            pl.BlockSpec((TM, D_in), lambda i: (i, 0)),
        ),
        compiler_params=pltpu.CompilerParams(**compiler_kwargs),
        cost_estimate=cost,
    )(x2d, w1, b1_2d, w2, b2_2d)
    return z, y


if __name__ == "__main__":
    # Small, PyTorch-consistent shapes: batch=2, channels=4, spatial=16x16.
    B, C, Hs, Ws = 2, 4, 16, 16
    D_in = C * Hs * Ws          # 1024 (lane-dense output)
    HID = 128                   # hidden (latent) width, lane-dense

    key = jax.random.PRNGKey(0)
    kx, k1, k2, k3, k4 = jax.random.split(key, 5)

    x = jax.random.normal(kx, (B, C, Hs, Ws), dtype=jnp.float32)
    # Init-time bf16 cast of weights (done once, not per call).
    w1 = (jax.random.normal(k1, (D_in, HID), dtype=jnp.float32) * 0.02
          ).astype(jnp.bfloat16)
    b1 = jax.random.normal(k2, (HID,), dtype=jnp.float32) * 0.02
    w2 = (jax.random.normal(k3, (HID, D_in), dtype=jnp.float32) * 0.02
          ).astype(jnp.bfloat16)
    b2 = jax.random.normal(k4, (D_in,), dtype=jnp.float32) * 0.02

    z, y = autoencoder_forward(x, w1, b1, w2, b2)
    jax.block_until_ready((z, y))

    # Pure-JAX reference mirroring the kernel's bf16 matmul / f32 accumulate.
    # (Note: not bit-equivalent to an f32 PyTorch forward; bf16 MXU operands.)
    x2d = x.reshape(B, -1)
    h_ref = jnp.dot(x2d.astype(jnp.bfloat16), w1, preferred_element_type=jnp.float32)
    z_ref = jnp.maximum(h_ref + b1, 0.0)
    y_lin = jnp.dot(z_ref.astype(jnp.bfloat16), w2, preferred_element_type=jnp.float32)
    y_ref = jax.nn.sigmoid(y_lin + b2)

    assert z.shape == (B, HID) and y.shape == (B, D_in)
    assert jnp.allclose(z.astype(jnp.float32), z_ref, atol=1e-2, rtol=1e-2)
    assert jnp.allclose(y.astype(jnp.float32), y_ref, atol=1e-2, rtol=1e-2)

    print("KERNEL_OK")
</pallas_src>

<mosaic_0001>
module attributes {stable_mosaic.version = 11 : i64} {
  func.func @autoencoder_kernel(%arg0: i32, %arg1: memref<2x1024xf32, #tpu.memory_space<vmem>>, %arg2: memref<1024x128xbf16, #tpu.memory_space<vmem>>, %arg3: memref<1x128xf32, #tpu.memory_space<vmem>>, %arg4: memref<128x1024xbf16, #tpu.memory_space<vmem>>, %arg5: memref<1x1024xf32, #tpu.memory_space<vmem>>, %arg6: memref<2x128xbf16, #tpu.memory_space<vmem>>, %arg7: memref<2x1024xbf16, #tpu.memory_space<vmem>>) attributes {dimension_semantics = [#tpu.dimension_semantics<parallel>], iteration_bounds = array<i64: 1>, scalar_prefetch = 0 : i64, scratch_operands = 0 : i64, tpu.core_type = #tpu.core_type<tc>, window_params = [{transform_indices = @transform_0, window_bounds = array<i64: 2, 1024>}, {pipeline_mode = #tpu.pipeline_mode<synchronous>, transform_indices = @transform_1, window_bounds = array<i64: 1024, 128>}, {pipeline_mode = #tpu.pipeline_mode<synchronous>, transform_indices = @transform_2, window_bounds = array<i64: 1, 128>}, {pipeline_mode = #tpu.pipeline_mode<synchronous>, transform_indices = @transform_3, window_bounds = array<i64: 128, 1024>}, {pipeline_mode = #tpu.pipeline_mode<synchronous>, transform_indices = @transform_4, window_bounds = array<i64: 1, 1024>}, {transform_indices = @transform_5, window_bounds = array<i64: 2, 128>}, {transform_indices = @transform_6, window_bounds = array<i64: 2, 1024>}]} {
    %c0 = arith.constant 0 : index
    %c0_0 = arith.constant 0 : index
    %0 = vector.load %arg1[%c0, %c0_0] : memref<2x1024xf32, #tpu.memory_space<vmem>>, vector<2x1024xf32>
    %1 = arith.truncf %0 : vector<2x1024xf32> to vector<2x1024xbf16>
    %c0_1 = arith.constant 0 : index
    %c0_2 = arith.constant 0 : index
    %2 = vector.load %arg2[%c0_1, %c0_2] : memref<1024x128xbf16, #tpu.memory_space<vmem>>, vector<1024x128xbf16>
    %cst = arith.constant dense<0.000000e+00> : vector<2x128xf32>
    %3 = tpu.matmul %1, %2, %cst {dimension_numbers = #tpu.dot_dimension_numbers<[1], [0], [0], [1], [0, 0, 1, 1], [], []>} : vector<2x1024xbf16>, vector<1024x128xbf16>, vector<2x128xf32> -> vector<2x128xf32>
    %c0_3 = arith.constant 0 : index
    %c0_4 = arith.constant 0 : index
    %4 = vector.load %arg3[%c0_3, %c0_4] : memref<1x128xf32, #tpu.memory_space<vmem>>, vector<1x128xf32>
    %5 = vector.broadcast %4 : vector<1x128xf32> to vector<2x128xf32>
    %6 = arith.addf %3, %5 : vector<2x128xf32>
    %cst_5 = arith.constant 0.000000e+00 : f32
    %7 = vector.broadcast %cst_5 : f32 to vector<2x128xf32>
    %8 = arith.maximumf %6, %7 : vector<2x128xf32>
    %9 = arith.truncf %8 : vector<2x128xf32> to vector<2x128xbf16>
    %c0_6 = arith.constant 0 : index
    %c0_7 = arith.constant 0 : index
    %10 = vector.load %arg6[%c0_6, %c0_7] : memref<2x128xbf16, #tpu.memory_space<vmem>>, vector<2x128xbf16>
    tpu.vector_store %arg6[%c0_6, %c0_7], %9 {strides = array<i32>} : memref<2x128xbf16, #tpu.memory_space<vmem>>, vector<2x128xbf16>,
    %11 = arith.truncf %8 : vector<2x128xf32> to vector<2x128xbf16>
    %c0_8 = arith.constant 0 : index
    %c0_9 = arith.constant 0 : index
    %12 = vector.load %arg4[%c0_8, %c0_9] : memref<128x1024xbf16, #tpu.memory_space<vmem>>, vector<128x1024xbf16>
    %cst_10 = arith.constant dense<0.000000e+00> : vector<2x1024xf32>
    %13 = tpu.matmul %11, %12, %cst_10 {dimension_numbers = #tpu.dot_dimension_numbers<[1], [0], [0], [1], [0, 0, 1, 1], [], []>} : vector<2x128xbf16>, vector<128x1024xbf16>, vector<2x1024xf32> -> vector<2x1024xf32>
    %c0_11 = arith.constant 0 : index
    %c0_12 = arith.constant 0 : index
    %14 = vector.load %arg5[%c0_11, %c0_12] : memref<1x1024xf32, #tpu.memory_space<vmem>>, vector<1x1024xf32>
    %15 = vector.broadcast %14 : vector<1x1024xf32> to vector<2x1024xf32>
    %16 = arith.addf %13, %15 : vector<2x1024xf32>
    %cst_13 = arith.constant 5.000000e-01 : f32
    %17 = vector.broadcast %cst_13 : f32 to vector<2x1024xf32>
    %18 = arith.mulf %17, %16 : vector<2x1024xf32>
    %19 = math.tanh %18 : vector<2x1024xf32>
    %cst_14 = arith.constant 5.000000e-01 : f32
    %20 = vector.broadcast %cst_14 : f32 to vector<2x1024xf32>
    %21 = arith.mulf %20, %19 : vector<2x1024xf32>
    %cst_15 = arith.constant 5.000000e-01 : f32
    %22 = vector.broadcast %cst_15 : f32 to vector<2x1024xf32>
    %23 = arith.addf %21, %22 : vector<2x1024xf32>
    %24 = arith.truncf %23 : vector<2x1024xf32> to vector<2x1024xbf16>
    %c0_16 = arith.constant 0 : index
    %c0_17 = arith.constant 0 : index
    %25 = vector.load %arg7[%c0_16, %c0_17] : memref<2x1024xbf16, #tpu.memory_space<vmem>>, vector<2x1024xbf16>
    tpu.vector_store %arg7[%c0_16, %c0_17], %24 {strides = array<i32>} : memref<2x1024xbf16, #tpu.memory_space<vmem>>, vector<2x1024xbf16>,
    return
  }
  func.func @transform_0(%arg0: i32) -> (i32, i32) {
    %c0_i32 = arith.constant 0 : i32
    %c0_i32_0 = arith.constant 0 : i32
    return %arg0, %c0_i32 : i32, i32
  }
  func.func @transform_1(%arg0: i32) -> (i32, i32) {
    %c0_i32 = arith.constant 0 : i32
    %c0_i32_0 = arith.constant 0 : i32
    %c0_i32_1 = arith.constant 0 : i32
    return %c0_i32, %c0_i32_0 : i32, i32
  }
  func.func @transform_2(%arg0: i32) -> (i32, i32) {
    %c0_i32 = arith.constant 0 : i32
    %c0_i32_0 = arith.constant 0 : i32
    %c0_i32_1 = arith.constant 0 : i32
    return %c0_i32, %c0_i32_0 : i32, i32
  }
  func.func @transform_3(%arg0: i32) -> (i32, i32) {
    %c0_i32 = arith.constant 0 : i32
    %c0_i32_0 = arith.constant 0 : i32
    %c0_i32_1 = arith.constant 0 : i32
    return %c0_i32, %c0_i32_0 : i32, i32
  }
  func.func @transform_4(%arg0: i32) -> (i32, i32) {
    %c0_i32 = arith.constant 0 : i32
    %c0_i32_0 = arith.constant 0 : i32
    %c0_i32_1 = arith.constant 0 : i32
    return %c0_i32, %c0_i32_0 : i32, i32
  }
  func.func @transform_5(%arg0: i32) -> (i32, i32) {
    %c0_i32 = arith.constant 0 : i32
    %c0_i32_0 = arith.constant 0 : i32
    return %arg0, %c0_i32 : i32, i32
  }
  func.func @transform_6(%arg0: i32) -> (i32, i32) {
    %c0_i32 = arith.constant 0 : i32
    %c0_i32_0 = arith.constant 0 : i32
    return %arg0, %c0_i32 : i32, i32
  }
}

</mosaic_0001>

<bundles_post_ra>
// kernel: tpu_custom_call.1
= control target key start
LH: loop header
LB: loop body
LE: loop exit
PB: predicated region body
PF: predicated region fallthrough
CT: control target
= control target key end

     0   :  { %12 = vsyncpa [#allocation3], 0  ;;  %s2072_s0 = inlined_call_operand.hbm [shape: f32[2,1024], index: 0, kind: input, shape index: {}]   ;;  %s2073_s1 = inlined_call_operand.hbm [shape: bf16[1024,128], index: 1, kind: input, shape index: {}]   ;;  %s2074_s2 = inlined_call_operand.vmem [shape: f32[1,128], index: 2, kind: input, shape index: {}]   ;;  %s2075_s3 = inlined_call_operand.hbm [shape: bf16[128,1024], index: 3, kind: input, shape index: {}]   ;;  %s2076_s4 = inlined_call_operand.hbm [shape: f32[1,1024], index: 4, kind: input, shape index: {}]   ;;  %s2077_s5 = inlined_call_operand.hbm [shape: bf16[2,128], index: 5, kind: output, shape index: {0}]   ;;  %s2078_s6 = inlined_call_operand.hbm [shape: bf16[2,1024], index: 6, kind: output, shape index: {1}]  }
   0x1   :  { %13 = vsyncpa [#allocation6], 0 }
   0x2   :  { %14 = vsyncpa [#allocation9], 0 }
   0x3   :  { %15 = vsyncpa [#allocation4], 0 }
   0x4   :  { %16 = vsyncpa [#allocation12], 0  ;;  %s1978_s21 = smov [#allocation5]  }
   0x5   :  { %s32_s22 = sshll.u32 %s1978_s21, 4  ;;  %s33_s22 = int_to_ptr.vmem [resolvable:$true] %s32_s22 }
   0x6   :  { %s1856_s23 = scalar_lea.vmem %s33_s22, 8192  ;;  %p1861_p1 = scmp.lt.s32.totalorder %s33_s22, %s33_s22 }
   0x7   :  { %p1857_p0 = scmp.ne.s32.totalorder %s33_s22, %s1856_s23  ;;  %p1862_p2 = scmp.lt.s32.totalorder %s1856_s23, %s1856_s23 }
   0x9   :  { %p1863_p3 = por %p1862_p2, %p1861_p1 }
   0xb   :  { %p1864_p4 = pnand %p1863_p3, %p1857_p0 }
   0xd   :  { %1867 = shalt.err (!%p1864_p4)
}
   0xe   :  { %s1979_s24 = smov 64   ;;  %s1980_s25 = smov 4  }
   0xf   :  { %38 = dma.hbm_to_vmem [thread:$0]  %s2073_s1, 8192, %s33_s22, [#allocation6], %s1979_s24, %s1979_s24, %s1980_s25  }
  0x10   :  { %s1981_s28 = smov [#allocation2]   ;;  %s1982_s30 = smov [#allocation7]  }
  0x11   :  { %s23_s29 = sshll.u32 %s1981_s28, 4  ;;  %s46_s7 = sshll.u32 %s1982_s30, 4  ;;  %s24_s29 = int_to_ptr.vmem [resolvable:$true] %s23_s29  ;;  %s47_s7 = int_to_ptr.vmem [resolvable:$true] %s46_s7 }
  0x12   :  { %s1876_s8 = scalar_lea.vmem %s24_s29, 256  ;;  %p1881_p6 = scmp.lt.s32.totalorder %s24_s29, %s24_s29 }
  0x13   :  { %p1877_p5 = scmp.ne.s32.totalorder %s24_s29, %s1876_s8  ;;  %p1882_p7 = scmp.lt.s32.totalorder %s1876_s8, %s1876_s8 }
  0x15   :  { %p1883_p8 = por %p1882_p7, %p1881_p6 }
  0x17   :  { %p1884_p9 = pnand %p1883_p8, %p1877_p5 }
  0x19   :  { %1887 = shalt.err (!%p1884_p9)
}
  0x1a   :  { %26 = dma.hbm_to_vmem [thread:$0]  %s2072_s0, 256, %s24_s29, [#allocation3]  }
  0x1b   :  { %s1896_s11 = scalar_lea.vmem %s47_s7, 8192  ;;  %p1901_p11 = scmp.lt.s32.totalorder %s47_s7, %s47_s7 }
  0x1c   :  { %p1897_p10 = scmp.ne.s32.totalorder %s47_s7, %s1896_s11  ;;  %p1902_p12 = scmp.lt.s32.totalorder %s1896_s11, %s1896_s11 }
  0x1e   :  { %p1903_p13 = por %p1902_p12, %p1901_p11 }
  0x20   :  { %p1904_p0 = pnand %p1903_p13, %p1897_p10 }
  0x22   :  { %1907 = shalt.err (!%p1904_p0)
}
  0x23   :  { %s1983_s1 = smov 512   ;;  %s1984_s12 = smov 32  }
  0x24   :  { %52 = dma.hbm_to_vmem [thread:$0]  %s2075_s3, 8192, %s47_s7, [#allocation6], %s1983_s1, %s1983_s1, %s1984_s12  }
  0x25   :  { %s1985_s15 = smov [#allocation8]  }
  0x26   :  { %s59_s16 = sshll.u32 %s1985_s15, 4  ;;  %s60_s16 = int_to_ptr.vmem [resolvable:$true] %s59_s16 }
  0x27   :  { %s1916_s17 = scalar_lea.vmem %s60_s16, 128  ;;  %p1921_p2 = scmp.lt.s32.totalorder %s60_s16, %s60_s16 }
  0x28   :  { %p1917_p1 = scmp.ne.s32.totalorder %s60_s16, %s1916_s17  ;;  %p1922_p3 = scmp.lt.s32.totalorder %s1916_s17, %s1916_s17 }
  0x2a   :  { %p1923_p4 = por %p1922_p3, %p1921_p2 }
  0x2c   :  { %p1924_p5 = pnand %p1923_p4, %p1917_p1 }
  0x2e   :  { %1927 = shalt.err (!%p1924_p5)
}
  0x2f   :  { %62 = dma.hbm_to_vmem [thread:$0]  %s2076_s4, 128, %s60_s16, [#allocation9]  }
  0x30   :  { %1968 = dma.done.wait [#allocation3], 256  }
  0x31   :  { %1969 = vsyncadd [#allocation3], 4294967040 }
  0x32   :  { %1970 = dma.done.wait [#allocation6], 16384  }
  0x33   :  { %1971 = vsyncadd [#allocation6], 4294950912 }
  0x34   :  { %1972 = dma.done.wait [#allocation9], 128  }
  0x35   :  { %1973 = vsyncadd [#allocation9], 4294967168  ;;  %v1766_v0 = vld [vmem:[#allocation5 + $0x78] sm:$0xff]   ;;  %v1770_v4 = vld [vmem:[#allocation5 + $0x70] sm:$0xff]   ;;  %v1986_v22 = vmov 1983009808   ;;  %v84_v24 = vlaneseq }
  0x36   :  { %v1767_v1 = vld [vmem:[#allocation5 + $0xf8] sm:$0xff]   ;;  %1665 = vmatprep.subr.bf16.mxu0 %v1766_v0  ;;  %v1771_v5 = vld [vmem:[#allocation5 + $0xf0] sm:$0xff]   ;;  %v1774_v8 = vld [vmem:[#allocation5 + $0x68] sm:$0xff]   ;;  %v82_v23 = vunpack.c.l.s4 %v1986_v22 }
  0x37   :  { %v1768_v2 = vld [vmem:[#allocation5 + $0x38] sm:$0xff]   ;;  %1687 = vmatprep.subr.bf16.mxu1 %v1767_v1  ;;  %v1772_v6 = vld [vmem:[#allocation5 + $0x30] sm:$0xff]   ;;  %v1775_v9 = vld [vmem:[#allocation5 + $0xe8] sm:$0xff]   ;;  %v2038_v30 = vshrl.u32 %v84_v24, 7 }
  0x38   :  { %v1769_v3 = vld [vmem:[#allocation5 + $0xb8] sm:$0xff]   ;;  %1666 = vmatpush3.bf16.msra.mxu0 %v1768_v2  ;;  %v1773_v7 = vld [vmem:[#allocation5 + $0xb0] sm:$0xff]   ;;  %v1776_v10 = vld [vmem:[#allocation5 + $0x28] sm:$0xff]   ;;  %v83_v29 = vunpack.c.0.s8 %v82_v23 }
  0x39   :  { %1688 = vmatpush3.bf16.msra.mxu1 %v1769_v3  ;;  %1667 = vmatprep.subr.bf16.mxu0 %v1770_v4  ;;  %v1777_v11 = vld [vmem:[#allocation5 + $0xa8] sm:$0xff]   ;;  %v1778_v12 = vld [vmem:[#allocation5 + $0x60] sm:$0xff]   ;;  %v1782_v16 = vld [vmem:[#allocation5 + $0x58] sm:$0xff]  }
  0x3a   :  { %1689 = vmatprep.subr.bf16.mxu1 %v1771_v5  ;;  %v1779_v13 = vld [vmem:[#allocation5 + $0xe0] sm:$0xff]   ;;  %v1783_v17 = vld [vmem:[#allocation5 + $0xd8] sm:$0xff]   ;;  %v1786_v20 = vld [vmem:[#allocation5 + $0x50] sm:$0xff]   ;;  %v2041_v35 = vsub.s32 %v83_v29, %v2038_v30 }
  0x3b   :  { %v1780_v14 = vld [vmem:[#allocation5 + $0x20] sm:$0xff]   ;;  %v1784_v18 = vld [vmem:[#allocation5 + $0x18] sm:$0xff]   ;;  %v1787_v21 = vld [vmem:[#allocation5 + $0xd0] sm:$0xff]  }
  0x3c   :  { %1668 = vmatpush3.bf16.msra.mxu0 %v1772_v6  ;;  %v1781_v15 = vld [vmem:[#allocation5 + $0xa0] sm:$0xff]   ;;  %v1785_v19 = vld [vmem:[#allocation5 + $0x98] sm:$0xff]   ;;  %v1788_v25 = vld [vmem:[#allocation5 + $0x10] sm:$0xff]  }
  0x3d   :  { %1690 = vmatpush3.bf16.msra.mxu1 %v1773_v7  ;;  %1669 = vmatprep.subr.bf16.mxu0 %v1774_v8  ;;  %v1789_v26 = vld [vmem:[#allocation5 + $0x90] sm:$0xff]   ;;  %v1790_v27 = vld [vmem:[#allocation5 + $0x48] sm:$0xff]   ;;  %v1794_v33 = vld [vmem:[#allocation5 + $0x40] sm:$0xff]  }
  0x3e   :  { %1691 = vmatprep.subr.bf16.mxu1 %v1775_v9  ;;  %v1791_v28 = vld [vmem:[#allocation5 + $0xc8] sm:$0xff]   ;;  %v1795_v34 = vld [vmem:[#allocation5 + $0xc0] sm:$0xff]   ;;  %v76_v38 = vld [vmem:[#allocation2] sm:$0xff] }
  0x3f   :  { %v1792_v31 = vld [vmem:[#allocation5 + $0x8] sm:$0xff]   ;;  %v1796_v36 = vld [vmem:[#allocation5] sm:$0xff]   ;;  %v87_v39 = vrot.slane %v76_v38, %v2041_v35  ;;  %v80_v40 = vcombine.high %v76_v38, %v76_v38  ;;  %v1799_v41 = vld [vmem:[#allocation5 + $0x178] sm:$0xff]  }
  0x40   :  { %1670 = vmatpush3.bf16.msra.mxu0 %v1776_v10  ;;  %v1793_v32 = vld [vmem:[#allocation5 + $0x88] sm:$0xff]   ;;  %v1797_v37 = vld [vmem:[#allocation5 + $0x80] sm:$0xff]   ;;  %v1800_v42 = vld [vmem:[#allocation5 + $0x1f8] sm:$0xff]  }
  0x41   :  { %1692 = vmatpush3.bf16.msra.mxu1 %v1777_v11  ;;  %1671 = vmatprep.subr.bf16.mxu0 %v1778_v12  ;;  %v95_v43 = vcombine.high %v87_v39, %v87_v39  ;;  %v94_v44 = vrot.slane %v80_v40, %v2041_v35  ;;  %v122_v45 = vpack.c.bf16 %v87_v39, %v87_v39  ;;  %v1801_v48 = vld [vmem:[#allocation5 + $0x138] sm:$0xff]   ;;  %v1803_v50 = vld [vmem:[#allocation5 + $0x170] sm:$0xff]   ;;  %v1807_v55 = vld [vmem:[#allocation5 + $0x168] sm:$0xff]  }
  0x42   :  { %1693 = vmatprep.subr.bf16.mxu1 %v1779_v13  ;;  %v1802_v52 = vld [vmem:[#allocation5 + $0x1b8] sm:$0xff]   ;;  %v1804_v53 = vld [vmem:[#allocation5 + $0x1f0] sm:$0xff]   ;;  %v1808_v57 = vld [vmem:[#allocation5 + $0x1e8] sm:$0xff]  }
  0x43   :  { %v123_v46 = vpack.c.bf16 %v95_v43, %v95_v43  ;;  %v96_v47 = vcombine.high %v94_v44, %v94_v44  ;;  %v124_v49 = vpack.c.bf16 %v94_v44, %v94_v44  ;;  %v1805_v54 = vld [vmem:[#allocation5 + $0x130] sm:$0xff]   ;;  %v1809_v58 = vld [vmem:[#allocation5 + $0x128] sm:$0xff]   ;;  %v1811_v59 = vld [vmem:[#allocation5 + $0x160] sm:$0xff]  }
  0x44   :  { %1672 = vmatpush3.bf16.msra.mxu0 %v1780_v14  ;;  %v1806_v56 = vld [vmem:[#allocation5 + $0x1b0] sm:$0xff]   ;;  %v1810_v60 = vld [vmem:[#allocation5 + $0x1a8] sm:$0xff]   ;;  %v1812_v61 = vld [vmem:[#allocation5 + $0x1e0] sm:$0xff]  }
  0x45   :  { %1694 = vmatpush3.bf16.msra.mxu1 %v1781_v15  ;;  %1673 = vmatprep.subr.bf16.mxu0 %v1782_v16  ;;  %v125_v51 = vpack.c.bf16 %v96_v47, %v96_v47  ;;  %v1813_v62 = vld [vmem:[#allocation5 + $0x120] sm:$0xff]   ;;  %v1815_v63 = vld [vmem:[#allocation5 + $0x158] sm:$0xff]   ;;  %v1819_v3 = vld [vmem:[#allocation5 + $0x150] sm:$0xff]  }
  0x46   :  { %1695 = vmatprep.subr.bf16.mxu1 %v1783_v17  ;;  %681 = vmatprep.mubr.bf16.mxu0 %v123_v46  ;;  %v1814_v0 = vld [vmem:[#allocation5 + $0x1a0] sm:$0xff]   ;;  %v1816_v1 = vld [vmem:[#allocation5 + $0x1d8] sm:$0xff]   ;;  %v1820_v5 = vld [vmem:[#allocation5 + $0x1d0] sm:$0xff]  }
  0x47   :  { %721 = vmatprep.mubr.bf16.mxu1 %v125_v51  ;;  %v1817_v2 = vld [vmem:[#allocation5 + $0x118] sm:$0xff]   ;;  %v1821_v6 = vld [vmem:[#allocation5 + $0x110] sm:$0xff]   ;;  %v1823_v7 = vld [vmem:[#allocation5 + $0x148] sm:$0xff]  }
  0x48   :  { %1674 = vmatpush3.bf16.msra.mxu0 %v1784_v18  ;;  %v1818_v4 = vld [vmem:[#allocation5 + $0x198] sm:$0xff]   ;;  %v1822_v8 = vld [vmem:[#allocation5 + $0x190] sm:$0xff]   ;;  %v1824_v9 = vld [vmem:[#allocation5 + $0x1c8] sm:$0xff]  }
  0x49   :  { %1696 = vmatpush3.bf16.msra.mxu1 %v1785_v19  ;;  %1675 = vmatprep.subr.bf16.mxu0 %v1786_v20  ;;  %v1825_v10 = vld [vmem:[#allocation5 + $0x108] sm:$0xff]   ;;  %v1827_v11 = vld [vmem:[#allocation5 + $0x140] sm:$0xff]   ;;  %v77_v14 = vld [vmem:[#allocation2 + $0x8] sm:$0xff] }
  0x4a   :  { %1697 = vmatprep.subr.bf16.mxu1 %v1787_v21  ;;  %v1826_v12 = vld [vmem:[#allocation5 + $0x188] sm:$0xff]   ;;  %v1828_v13 = vld [vmem:[#allocation5 + $0x1c0] sm:$0xff]   ;;  %v104_v16 = vrot.slane %v77_v14, %v2041_v35  ;;  %v97_v17 = vcombine.high %v77_v14, %v77_v14 }
  0x4b   :  { %v1829_v15 = vld [vmem:[#allocation5 + $0x100] sm:$0xff]   ;;  %v861_v38 = vld [vmem:[#allocation7 + $0x188] sm:$0xff] }
  0x4c   :  { %1676 = vmatpush3.bf16.msra.mxu0 %v1788_v25  ;;  %v1830_v18 = vld [vmem:[#allocation5 + $0x180] sm:$0xff]   ;;  %v112_v19 = vcombine.high %v104_v16, %v104_v16  ;;  %v111_v20 = vrot.slane %v97_v17, %v2041_v35  ;;  %v126_v21 = vpack.c.bf16 %v104_v16, %v104_v16  ;;  %v865_v39 = vld [vmem:[#allocation7 + $0x1a8] sm:$0xff] }
  0x4d   :  { %1698 = vmatpush3.bf16.msra.mxu1 %v1789_v26  ;;  %1677 = vmatprep.subr.bf16.mxu0 %v1790_v27  ;;  %v868_v26 = vld [vmem:[#allocation7 + $0x1c0] sm:$0xff]  ;;  %v853_v43 = vld [vmem:[#allocation7 + $0x148] sm:$0xff]  ;;  %v1647_v46 = vcombine.low %v861_v38, %v865_v39 }
  0x4e   :  { %1699 = vmatprep.subr.bf16.mxu1 %v1791_v28  ;;  %v127_v22 = vpack.c.bf16 %v112_v19, %v112_v19  ;;  %v113_v23 = vcombine.high %v111_v20, %v111_v20  ;;  %v128_v24 = vpack.c.bf16 %v111_v20, %v111_v20  ;;  %v872_v27 = vld [vmem:[#allocation7 + $0x1e0] sm:$0xff]  ;;  %v869_v28 = vld [vmem:[#allocation7 + $0x1c8] sm:$0xff] }
  0x4f   :  { %v1653_v29 = vcombine.low %v868_v26, %v872_v27  ;;  %v852_v40 = vld [vmem:[#allocation7 + $0x140] sm:$0xff]  ;;  %v857_v44 = vld [vmem:[#allocation7 + $0x168] sm:$0xff] }
  0x50   :  { %1678 = vmatpush3.bf16.msra.mxu0 %v1792_v31  ;;  %v129_v25 = vpack.c.bf16 %v113_v23, %v113_v23  ;;  %v1654_v31 = vcombine.high %v868_v26, %v872_v27  ;;  %v845_v51 = vld [vmem:[#allocation7 + $0x108] sm:$0xff]  ;;  %v812_v19 = vld [vmem:[#allocation7] sm:$0xff]  ;;  %v870_v27 = vld [vmem:[#allocation7 + $0x1d0] sm:$0xff] }
  0x51   :  { %1700 = vmatpush3.bf16.msra.mxu1 %v1793_v32  ;;  %1679 = vmatprep.subr.bf16.mxu0 %v1794_v33  ;;  %v873_v32 = vld [vmem:[#allocation7 + $0x1e8] sm:$0xff]  ;;  %v860_v33 = vld [vmem:[#allocation7 + $0x180] sm:$0xff] }
  0x52   :  { %1701 = vmatprep.subr.bf16.mxu1 %v1795_v34  ;;  %v864_v34 = vld [vmem:[#allocation7 + $0x1a0] sm:$0xff]  ;;  %v1655_v35 = vcombine.low %v869_v28, %v873_v32  ;;  %v817_v23 = vld [vmem:[#allocation7 + $0x28] sm:$0xff] }
  0x53   :  { %v816_v20 = vld [vmem:[#allocation7 + $0x20] sm:$0xff] }
  0x54   :  { %1680 = vmatpush3.bf16.msra.mxu0 %v1796_v36  ;;  %v1656_v36 = vcombine.high %v869_v28, %v873_v32  ;;  %v874_v28 = vld [vmem:[#allocation7 + $0x1f0] sm:$0xff]  ;;  %v875_v32 = vld [vmem:[#allocation7 + $0x1f8] sm:$0xff] }
  0x55   :  { %1702 = vmatpush3.bf16.msra.mxu1 %v1797_v37  ;;  %1709 = vmatprep.subr.bf16.mxu0 %v1799_v41  ;;  %v1646_v37 = vcombine.high %v860_v33, %v864_v34  ;;  %v1648_v41 = vcombine.high %v861_v38, %v865_v39 }
  0x56   :  { %1731 = vmatprep.subr.bf16.mxu1 %v1800_v42  ;;  %v856_v42 = vld [vmem:[#allocation7 + $0x160] sm:$0xff] }
  0x57   :  { %682 = vmatmul.mubr.bf16.vlgmr.msra.gmra.mxu0 %v122_v45  ;;  %v1645_v45 = vcombine.low %v860_v33, %v864_v34  ;;  %v1638_v47 = vcombine.high %v852_v40, %v856_v42  ;;  %v1657_v33 = vcombine.low %v870_v27, %v874_v28 }
  0x58   :  { %1710 = vmatpush3.bf16.msra.mxu0 %v1801_v48  ;;  %722 = vmatmul.mubr.bf16.vlgmr.msra.gmra.mxu1 %v124_v49  ;;  %v1640_v48 = vcombine.high %v853_v43, %v857_v44  ;;  %v844_v49 = vld [vmem:[#allocation7 + $0x100] sm:$0xff] }
  0x59   :  { %1711 = vmatprep.subr.bf16.mxu0 %v1803_v50  ;;  %1732 = vmatpush3.bf16.msra.mxu1 %v1802_v52  ;;  %v848_v50 = vld [vmem:[#allocation7 + $0x120] sm:$0xff]  ;;  %v849_v52 = vld [vmem:[#allocation7 + $0x128] sm:$0xff] }
  0x5a   :  { %1733 = vmatprep.subr.bf16.mxu1 %v1804_v53  ;;  %761 = vmatprep.mubr.bf16.mxu0 %v127_v22  ;;  %v1637_v53 = vcombine.low %v852_v40, %v856_v42  ;;  %v1598_v22 = vcombine.high %v812_v19, %v816_v20 }
  0x5b   :  { %801 = vmatprep.mubr.bf16.mxu1 %v129_v25 }
  0x5c   :  { %1712 = vmatpush3.bf16.msra.mxu0 %v1805_v54  ;;  %v1639_v54 = vcombine.low %v853_v43, %v857_v44 }
  0x5d   :  { %1713 = vmatprep.subr.bf16.mxu0 %v1807_v55  ;;  %1734 = vmatpush3.bf16.msra.mxu1 %v1806_v56  ;;  %v1630_v55 = vcombine.high %v844_v49, %v848_v50  ;;  %v1632_v56 = vcombine.high %v845_v51, %v849_v52 }
  0x5e   :  { %1735 = vmatprep.subr.bf16.mxu1 %v1808_v57  ;;  %v836_v57 = vld [vmem:[#allocation7 + $0xc0] sm:$0xff] }
  0x60   :  { %1714 = vmatpush3.bf16.msra.mxu0 %v1809_v58  ;;  %v840_v58 = vld [vmem:[#allocation7 + $0xe0] sm:$0xff] }
  0x61   :  { %1715 = vmatprep.subr.bf16.mxu0 %v1811_v59  ;;  %1736 = vmatpush3.bf16.msra.mxu1 %v1810_v60  ;;  %v837_v59 = vld [vmem:[#allocation7 + $0xc8] sm:$0xff] }
  0x62   :  { %1737 = vmatprep.subr.bf16.mxu1 %v1812_v61  ;;  %v841_v60 = vld [vmem:[#allocation7 + $0xe8] sm:$0xff]  ;;  %v1629_v61 = vcombine.low %v844_v49, %v848_v50 }
  0x64   :  { %1716 = vmatpush3.bf16.msra.mxu0 %v1813_v62  ;;  %v1631_v62 = vcombine.low %v845_v51, %v849_v52 }
  0x65   :  { %1717 = vmatprep.subr.bf16.mxu0 %v1815_v63  ;;  %1738 = vmatpush3.bf16.msra.mxu1 %v1814_v0  ;;  %v1622_v63 = vcombine.high %v836_v57, %v840_v58  ;;  %v1624_v0 = vcombine.high %v837_v59, %v841_v60 }
  0x66   :  { %1739 = vmatprep.subr.bf16.mxu1 %v1816_v1  ;;  %v1621_v1 = vcombine.low %v836_v57, %v840_v58 }
  0x68   :  { %1718 = vmatpush3.bf16.msra.mxu0 %v1817_v2  ;;  %v1623_v2 = vcombine.low %v837_v59, %v841_v60 }
  0x69   :  { %1719 = vmatprep.subr.bf16.mxu0 %v1819_v3  ;;  %1740 = vmatpush3.bf16.msra.mxu1 %v1818_v4  ;;  %v828_v3 = vld [vmem:[#allocation7 + $0x80] sm:$0xff] }
  0x6a   :  { %1741 = vmatprep.subr.bf16.mxu1 %v1820_v5  ;;  %v832_v4 = vld [vmem:[#allocation7 + $0xa0] sm:$0xff]  ;;  %v829_v5 = vld [vmem:[#allocation7 + $0x88] sm:$0xff] }
  0x6c   :  { %1720 = vmatpush3.bf16.msra.mxu0 %v1821_v6  ;;  %v1614_v6 = vcombine.high %v828_v3, %v832_v4 }
  0x6d   :  { %1721 = vmatprep.subr.bf16.mxu0 %v1823_v7  ;;  %1742 = vmatpush3.bf16.msra.mxu1 %v1822_v8  ;;  %v833_v7 = vld [vmem:[#allocation7 + $0xa8] sm:$0xff]  ;;  %v1613_v8 = vcombine.low %v828_v3, %v832_v4 }
  0x6e   :  { %1743 = vmatprep.subr.bf16.mxu1 %v1824_v9  ;;  %v1615_v9 = vcombine.low %v829_v5, %v833_v7 }
  0x70   :  { %1722 = vmatpush3.bf16.msra.mxu0 %v1825_v10  ;;  %v1616_v10 = vcombine.high %v829_v5, %v833_v7  ;;  %v858_v7 = vld [vmem:[#allocation7 + $0x170] sm:$0xff] }
  0x71   :  { %1723 = vmatprep.subr.bf16.mxu0 %v1827_v11  ;;  %1744 = vmatpush3.bf16.msra.mxu1 %v1826_v12  ;;  %v820_v11 = vld [vmem:[#allocation7 + $0x40] sm:$0xff] }
  0x72   :  { %1745 = vmatprep.subr.bf16.mxu1 %v1828_v13  ;;  %v824_v12 = vld [vmem:[#allocation7 + $0x60] sm:$0xff]  ;;  %v821_v13 = vld [vmem:[#allocation7 + $0x48] sm:$0xff] }
  0x73   :  { %v1606_v14 = vcombine.high %v820_v11, %v824_v12  ;;  %v1605_v16 = vcombine.low %v820_v11, %v824_v12 }
  0x74   :  { %1724 = vmatpush3.bf16.msra.mxu0 %v1829_v15  ;;  %v825_v15 = vld [vmem:[#allocation7 + $0x68] sm:$0xff] }
  0x75   :  { %1746 = vmatpush3.bf16.msra.mxu1 %v1830_v18  ;;  %1238 = vmatprep.subr.bf16.mxu0 %v1654_v31  ;;  %v1607_v17 = vcombine.low %v821_v13, %v825_v15  ;;  %v1608_v18 = vcombine.high %v821_v13, %v825_v15  ;;  %v1658_v31 = vcombine.high %v870_v27, %v874_v28  ;;  %v850_v15 = vld [vmem:[#allocation7 + $0x130] sm:$0xff] }
  0x76   :  { %1279 = vmatprep.subr.bf16.mxu1 %v1656_v36  ;;  %v1987_v36 = vmov 0  }
  0x77   :  { %762 = vmatmul.mubr.bf16.vlgmr.msra.gmra.mxu0 %v126_v21  ;;  %v813_v21 = vld [vmem:[#allocation7 + $0x8] sm:$0xff] }
  0x78   :  { %802 = vmatmul.mubr.bf16.vlgmr.msra.gmra.mxu1 %v128_v24  ;;  %1239 = vmatpush1.bf16.msra.mxu0 %v1653_v29  ;;  %v1597_v24 = vcombine.low %v812_v19, %v816_v20  ;;  %v1599_v25 = vcombine.low %v813_v21, %v817_v23  ;;  %v1600_v26 = vcombine.high %v813_v21, %v817_v23  ;;  %v871_v29 = vld [vmem:[#allocation7 + $0x1d8] sm:$0xff]  ;;  %v842_v23 = vld [vmem:[#allocation7 + $0xf0] sm:$0xff] }
  0x79   :  { %1280 = vmatpush1.bf16.msra.mxu1 %v1655_v35  ;;  %1240 = vmatprep.subr.bf16.mxu0 %v1646_v37  ;;  %v1659_v34 = vcombine.low %v871_v29, %v875_v32  ;;  %v1660_v35 = vcombine.high %v871_v29, %v875_v32  ;;  %v834_v32 = vld [vmem:[#allocation7 + $0xb0] sm:$0xff] }
  0x7a   :  { %1281 = vmatprep.subr.bf16.mxu1 %v1648_v41  ;;  %1270 = vmatprep.mubr.bf16.mxu0 %v1987_v36 }
  0x7b   :  { %1311 = vmatprep.mubr.bf16.mxu1 %v1987_v36 }
  0x7c   :  { %1241 = vmatpush1.bf16.msra.mxu0 %v1645_v45 }
  0x7d   :  { %1282 = vmatpush1.bf16.msra.mxu1 %v1647_v46  ;;  %1242 = vmatprep.subr.bf16.mxu0 %v1638_v47  ;;  %v1532_v46 = vld [vmem:[%s2074_s2] ss:$0 sm:$0xff]  ;;  %s1988_s2 = smov [#allocation10]  }
  0x7e   :  { %1283 = vmatprep.subr.bf16.mxu1 %v1640_v48  ;;  %s1507_s19 = sshll.u32 %s1988_s2, 4  ;;  %s1508_s19 = int_to_ptr.vmem [resolvable:$true] %s1507_s19 }
  0x7f   :  { %s1928_s20 = scalar_lea.vmem %s1508_s19, 16  ;;  %s1932_s21 = scalar_lea.vmem %s1508_s19, 32 }
  0x80   :  { %1243 = vmatpush1.bf16.msra.mxu0 %v1637_v53  ;;  %p1929_p6 = scmp.ne.s32.totalorder %s1508_s19, %s1928_s20  ;;  %p1933_p7 = scmp.lt.s32.totalorder %s1508_s19, %s1508_s19 }
  0x81   :  { %1284 = vmatpush1.bf16.msra.mxu1 %v1639_v54  ;;  %1244 = vmatprep.subr.bf16.mxu0 %v1630_v55  ;;  %p1934_p8 = scmp.lt.s32.totalorder %s1932_s21, %s1928_s20 }
  0x82   :  { %1285 = vmatprep.subr.bf16.mxu1 %v1632_v56 }
  0x83   :  { %p1935_p9 = por %p1934_p8, %p1933_p7 }
  0x84   :  { %1245 = vmatpush1.bf16.msra.mxu0 %v1629_v61  ;;  %v862_v61 = vld [vmem:[#allocation7 + $0x190] sm:$0xff] }
  0x85   :  { %1286 = vmatpush1.bf16.msra.mxu1 %v1631_v62  ;;  %1246 = vmatprep.subr.bf16.mxu0 %v1622_v63  ;;  %v866_v63 = vld [vmem:[#allocation7 + $0x1b0] sm:$0xff]  ;;  %p1936_p10 = pnand %p1935_p9, %p1929_p6 }
  0x86   :  { %1287 = vmatprep.subr.bf16.mxu1 %v1624_v0  ;;  %v863_v0 = vld [vmem:[#allocation7 + $0x198] sm:$0xff]  ;;  %v1650_v4 = vcombine.high %v862_v61, %v866_v63 }
  0x88   :  { %1247 = vmatpush1.bf16.msra.mxu0 %v1621_v1  ;;  %v867_v1 = vld [vmem:[#allocation7 + $0x1b8] sm:$0xff] }
  0x89   :  { %1288 = vmatpush1.bf16.msra.mxu1 %v1623_v2  ;;  %1248 = vmatprep.subr.bf16.mxu0 %v1614_v6  ;;  %v1652_v5 = vcombine.high %v863_v0, %v867_v1  ;;  %v854_v6 = vld [vmem:[#allocation7 + $0x150] sm:$0xff]  ;;  %v1651_v11 = vcombine.low %v863_v0, %v867_v1 }
  0x8a   :  { %1289 = vmatprep.subr.bf16.mxu1 %v1616_v10  ;;  %v1649_v10 = vcombine.low %v862_v61, %v866_v63  ;;  %v1642_v12 = vcombine.high %v854_v6, %v858_v7 }
  0x8c   :  { %1249 = vmatpush1.bf16.msra.mxu0 %v1613_v8  ;;  %v855_v8 = vld [vmem:[#allocation7 + $0x158] sm:$0xff] }
  0x8d   :  { %1290 = vmatpush1.bf16.msra.mxu1 %v1615_v9  ;;  %1250 = vmatprep.subr.bf16.mxu0 %v1606_v14  ;;  %v859_v9 = vld [vmem:[#allocation7 + $0x178] sm:$0xff]  ;;  %v846_v14 = vld [vmem:[#allocation7 + $0x110] sm:$0xff] }
  0x8e   :  { %1291 = vmatprep.subr.bf16.mxu1 %v1608_v18  ;;  %v1644_v13 = vcombine.high %v855_v8, %v859_v9  ;;  %v1641_v18 = vcombine.low %v854_v6, %v858_v7  ;;  %v1643_v19 = vcombine.low %v855_v8, %v859_v9  ;;  %v1634_v20 = vcombine.high %v846_v14, %v850_v15 }
  0x90   :  { %1251 = vmatpush1.bf16.msra.mxu0 %v1605_v16  ;;  %v847_v16 = vld [vmem:[#allocation7 + $0x118] sm:$0xff] }
  0x91   :  { %1292 = vmatpush1.bf16.msra.mxu1 %v1607_v17  ;;  %1252 = vmatprep.subr.bf16.mxu0 %v1598_v22  ;;  %v851_v17 = vld [vmem:[#allocation7 + $0x138] sm:$0xff]  ;;  %v838_v22 = vld [vmem:[#allocation7 + $0xd0] sm:$0xff] }
  0x92   :  { %1293 = vmatprep.subr.bf16.mxu1 %v1600_v26  ;;  %v1636_v21 = vcombine.high %v847_v16, %v851_v17  ;;  %v1633_v26 = vcombine.low %v846_v14, %v850_v15  ;;  %v1635_v27 = vcombine.low %v847_v16, %v851_v17  ;;  %v1626_v28 = vcombine.high %v838_v22, %v842_v23 }
  0x94   :  { %1253 = vmatpush1.bf16.msra.mxu0 %v1597_v24  ;;  %v839_v24 = vld [vmem:[#allocation7 + $0xd8] sm:$0xff] }
  0x95   :  { %1294 = vmatpush1.bf16.msra.mxu1 %v1599_v25  ;;  %1320 = vmatprep.subr.bf16.mxu0 %v1658_v31  ;;  %v843_v25 = vld [vmem:[#allocation7 + $0xf8] sm:$0xff]  ;;  %v830_v31 = vld [vmem:[#allocation7 + $0x90] sm:$0xff] }
  0x96   :  { %1361 = vmatprep.subr.bf16.mxu1 %v1660_v35  ;;  %v1628_v29 = vcombine.high %v839_v24, %v843_v25  ;;  %v1625_v35 = vcombine.low %v838_v22, %v842_v23 }
 0x117   :  { %v1681_v37 = vpop.f32.mrf.mxu0 }
 0x118   :  { %v1703_v38 = vpop.f32.mrf.mxu1 }
 0x119   :  { %v1682_v39 = vpop.f32.mrf.mxu0 }
 0x11a   :  { %v1704_v40 = vpop.f32.mrf.mxu1  ;;  %v1683_v45 = vadd.f32 %v1682_v39, %v1681_v37  ;;  %v1618_v37 = vcombine.high %v830_v31, %v834_v32  ;;  %v822_v39 = vld [vmem:[#allocation7 + $0x50] sm:$0xff] }
 0x11b   :  { %v1684_v41 = vpop.f32.mrf.mxu0  ;;  %v1705_v48 = vadd.f32 %v1704_v40, %v1703_v38  ;;  %v826_v40 = vld [vmem:[#allocation7 + $0x70] sm:$0xff] }
 0x11c   :  { %v1706_v42 = vpop.f32.mrf.mxu1  ;;  %v684_v47 = vadd.f32 %v1683_v45, %v1532_v46  ;;  %v823_v41 = vld [vmem:[#allocation7 + $0x58] sm:$0xff]  ;;  %v1610_v45 = vcombine.high %v822_v39, %v826_v40 }
 0x11d   :  { %v1685_v43 = vpop.f32.mrf.mxu0  ;;  %v827_v42 = vld [vmem:[#allocation7 + $0x78] sm:$0xff] }
 0x11e   :  { %v1707_v44 = vpop.f32.mrf.mxu1  ;;  %v724_v52 = vadd.f32 %v1705_v48, %v684_v47  ;;  %v1617_v43 = vcombine.low %v830_v31, %v834_v32  ;;  %v1612_v46 = vcombine.high %v823_v41, %v827_v42  ;;  %v814_v47 = vld [vmem:[#allocation7 + $0x10] sm:$0xff] }
 0x11f   :  { %v818_v48 = vld [vmem:[#allocation7 + $0x30] sm:$0xff] }
 0x137   :  { %v1725_v49 = vpop.f32.mrf.mxu0 }
 0x138   :  { %v1747_v50 = vpop.f32.mrf.mxu1 }
 0x139   :  { %v1726_v51 = vpop.f32.mrf.mxu0 }
 0x13a   :  { %v1727_v53 = vadd.f32 %v1726_v51, %v1725_v49  ;;  %v1748_v54 = vpop.f32.mrf.mxu1  ;;  %v815_v49 = vld [vmem:[#allocation7 + $0x18] sm:$0xff]  ;;  %v1609_v51 = vcombine.low %v822_v39, %v826_v40 }
 0x13b   :  { %v1728_v55 = vpop.f32.mrf.mxu0  ;;  %v1749_v57 = vadd.f32 %v1748_v54, %v1747_v50  ;;  %v819_v50 = vld [vmem:[#allocation7 + $0x38] sm:$0xff] }
 0x13c   :  { %v764_v56 = vadd.f32 %v1727_v53, %v724_v52  ;;  %v1750_v58 = vpop.f32.mrf.mxu1  ;;  %v1611_v52 = vcombine.low %v823_v41, %v827_v42  ;;  %v1602_v53 = vcombine.high %v814_v47, %v818_v48  ;;  %v1604_v54 = vcombine.high %v815_v49, %v819_v50 }
 0x13d   :  { %v1729_v59 = vpop.f32.mrf.mxu0  ;;  %v1601_v55 = vcombine.low %v814_v47, %v818_v48 }
 0x13e   :  { %v804_v60 = vadd.f32 %v1749_v57, %v764_v56  ;;  %v1751_v62 = vpop.f32.mrf.mxu1  ;;  %v1603_v56 = vcombine.low %v815_v49, %v819_v50 }
 0x140   :  { %v809_v2 = vmax.f32 %v804_v60, 0.0 }
 0x142   :  { %v2050_v3 = vpack.c.bf16 %v809_v2, %v809_v2 }
 0x144   :  { %811 = vst [vmem:[#allocation10] sm:$0x1] %v2050_v3  ;;  %1271 = vmatmul.mubr.bf16.vlgmr.msra.gmra.mxu0 %v2050_v3  ;;  %1312 = vmatmul.mubr.bf16.vlgmr.msra.gmra.mxu1 %v2050_v3 }
 0x145   :  { %1321 = vmatpush1.bf16.msra.mxu0 %v1657_v33  ;;  %1362 = vmatpush1.bf16.msra.mxu1 %v1659_v34  ;;  %v831_v33 = vld [vmem:[#allocation7 + $0x98] sm:$0xff] }
 0x146   :  { %1322 = vmatprep.subr.bf16.mxu0 %v1650_v4  ;;  %1363 = vmatprep.subr.bf16.mxu1 %v1652_v5  ;;  %v835_v34 = vld [vmem:[#allocation7 + $0xb8] sm:$0xff] }
 0x147   :  { %1352 = vmatprep.mubr.bf16.mxu0 %v1987_v36  ;;  %1393 = vmatprep.mubr.bf16.mxu1 %v1987_v36  ;;  %v1627_v36 = vcombine.low %v839_v24, %v843_v25  ;;  %v1620_v38 = vcombine.high %v831_v33, %v835_v34  ;;  %v1619_v44 = vcombine.low %v831_v33, %v835_v34 }
 0x149   :  { %1323 = vmatpush1.bf16.msra.mxu0 %v1649_v10  ;;  %1364 = vmatpush1.bf16.msra.mxu1 %v1651_v11 }
 0x14a   :  { %1324 = vmatprep.subr.bf16.mxu0 %v1642_v12  ;;  %1365 = vmatprep.subr.bf16.mxu1 %v1644_v13 }
 0x14d   :  { %1325 = vmatpush1.bf16.msra.mxu0 %v1641_v18  ;;  %1366 = vmatpush1.bf16.msra.mxu1 %v1643_v19 }
 0x14e   :  { %1326 = vmatprep.subr.bf16.mxu0 %v1634_v20  ;;  %1367 = vmatprep.subr.bf16.mxu1 %v1636_v21 }
 0x151   :  { %1327 = vmatpush1.bf16.msra.mxu0 %v1633_v26  ;;  %1368 = vmatpush1.bf16.msra.mxu1 %v1635_v27 }
 0x152   :  { %1328 = vmatprep.subr.bf16.mxu0 %v1626_v28  ;;  %1369 = vmatprep.subr.bf16.mxu1 %v1628_v29 }
 0x155   :  { %1329 = vmatpush1.bf16.msra.mxu0 %v1625_v35  ;;  %1370 = vmatpush1.bf16.msra.mxu1 %v1627_v36 }
 0x156   :  { %1330 = vmatprep.subr.bf16.mxu0 %v1618_v37  ;;  %1371 = vmatprep.subr.bf16.mxu1 %v1620_v38 }
 0x159   :  { %1331 = vmatpush1.bf16.msra.mxu0 %v1617_v43  ;;  %1372 = vmatpush1.bf16.msra.mxu1 %v1619_v44 }
 0x15a   :  { %1332 = vmatprep.subr.bf16.mxu0 %v1610_v45  ;;  %1373 = vmatprep.subr.bf16.mxu1 %v1612_v46 }
 0x15d   :  { %1333 = vmatpush1.bf16.msra.mxu0 %v1609_v51  ;;  %1374 = vmatpush1.bf16.msra.mxu1 %v1611_v52 }
 0x15e   :  { %1334 = vmatprep.subr.bf16.mxu0 %v1602_v53  ;;  %1375 = vmatprep.subr.bf16.mxu1 %v1604_v54 }
 0x161   :  { %1335 = vmatpush1.bf16.msra.mxu0 %v1601_v55  ;;  %1376 = vmatpush1.bf16.msra.mxu1 %v1603_v56 }
 0x164   :  { %1353 = vmatmul.mubr.bf16.vlgmr.msra.gmra.mxu0 %v2050_v3  ;;  %1394 = vmatmul.mubr.bf16.vlgmr.msra.gmra.mxu1 %v2050_v3 }
 0x165   :  { %1939 = shalt.err (!%p1936_p10)
}
 0x166   :  { %1510 = dma.vmem_to_hbm [thread:$0]  %s1508_s19, 16, %s2077_s5, [#allocation4]   ;;  %v884_v1 = vsub.s32 1, %v2038_v30  ;;  %v892_v2 = vsub.s32 3, %v2038_v30  ;;  %v880_v3 = vsub.s32 0, %v2038_v30  ;;  %v876_v4 = vld [vmem:[#allocation8] sm:$0xff] }
 0x167   :  { %v888_v5 = vsub.s32 2, %v2038_v30  ;;  %v896_v17 = vsub.s32 4, %v2038_v30  ;;  %v904_v18 = vsub.s32 6, %v2038_v30  ;;  %v900_v20 = vsub.s32 5, %v2038_v30  ;;  %s1990_s5 = smov [#allocation11]  }
 0x168   :  { %v885_v6 = vrot.slane %v876_v4, %v884_v1  ;;  %v893_v7 = vrot.slane %v876_v4, %v892_v2  ;;  %v881_v8 = vrot.slane %v876_v4, %v880_v3  ;;  %v908_v21 = vsub.s32 7, %v2038_v30  ;;  %s1517_s24 = sshll.u32 %s1990_s5, 4  ;;  %s1518_s24 = int_to_ptr.vmem [resolvable:$true] %s1517_s24 }
 0x169   :  { %v889_v9 = vrot.slane %v876_v4, %v888_v5  ;;  %v897_v22 = vrot.slane %v876_v4, %v896_v17  ;;  %v905_v23 = vrot.slane %v876_v4, %v904_v18  ;;  %v901_v24 = vrot.slane %v876_v4, %v900_v20  ;;  %s1948_s25 = scalar_lea.vmem %s1518_s24, 128  ;;  %p1953_p12 = scmp.lt.s32.totalorder %s1518_s24, %s1518_s24 }
 0x16a   :  { %v909_v25 = vrot.slane %v876_v4, %v908_v21  ;;  %v1989_v48 = vmov 1966171168   ;;  %p1949_p11 = scmp.ne.s32.totalorder %s1518_s24, %s1948_s25  ;;  %p1954_p13 = scmp.lt.s32.totalorder %s1948_s25, %s1948_s25 }
 0x16b   :  { %v1455_v49 = vunpack.c.l.s4 %v1989_v48 }
 0x16c   :  { %p1955_p0 = por %p1954_p13, %p1953_p12 }
 0x16d   :  { %v1456_v54 = vunpack.c.0.s8 %v1455_v49 }
 0x16e   :  { %p1956_p1 = pnand %p1955_p0, %p1949_p11 }
 0x204   :  { %v1272_v57 = vpop.f32.mrf.mxu0  ;;  %v1313_v58 = vpop.f32.mrf.mxu1 }
 0x205   :  { %v1273_v12 = vadd.f32 %v1272_v57, %v881_v8  ;;  %v1314_v13 = vadd.f32 %v1313_v58, %v889_v9 }
 0x206   :  { %v1274_v59 = vpop.f32.mrf.mxu0  ;;  %v1315_v60 = vpop.f32.mrf.mxu1 }
 0x207   :  { %v1275_v10 = vadd.f32 %v1274_v59, %v885_v6  ;;  %v1316_v11 = vadd.f32 %v1315_v60, %v893_v7  ;;  %v1402_v16 = vmul.f32 0.5, %v1273_v12  ;;  %v1404_v19 = vmul.f32 0.5, %v1314_v13 }
 0x208   :  { %v1276_v61 = vpop.f32.mrf.mxu0  ;;  %v1317_v62 = vpop.f32.mrf.mxu1 }
 0x209   :  { %v1403_v14 = vmul.f32 0.5, %v1275_v10  ;;  %v1405_v15 = vmul.f32 0.5, %v1316_v11 }
 0x20a   :  { %v1277_v63 = vpop.f32.mrf.mxu0  ;;  %v1318_v0 = vpop.f32.mrf.mxu1 }
 0x20b   :  { %1832 = vtanh.f32 %v1403_v14  ;;  %v1459_v63 = vsub.s32 %v1456_v54, %v2038_v30 }
 0x20c   :  { %1834 = vtanh.f32 %v1405_v15 }
 0x20d   :  { %1836 = vtanh.f32 %v1402_v16 }
 0x20e   :  { %1838 = vtanh.f32 %v1404_v19 }
 0x218   :  { %v1833_v43 = vpop.eup %1832 }
 0x219   :  { %v1835_v44 = vpop.eup %1834  ;;  %v1419_v47 = vmul.f32 0.5, %v1833_v43 }
 0x21a   :  { %v1837_v45 = vpop.eup %1836  ;;  %v1421_v50 = vmul.f32 0.5, %v1835_v44 }
 0x21b   :  { %v1839_v46 = vpop.eup %1838  ;;  %v1418_v51 = vmul.f32 0.5, %v1837_v45  ;;  %v1427_v53 = vadd.f32 0.5, %v1419_v47 }
 0x21c   :  { %v1420_v52 = vmul.f32 0.5, %v1839_v46  ;;  %v1429_v55 = vadd.f32 0.5, %v1421_v50 }
 0x21d   :  { %v1426_v57 = vadd.f32 0.5, %v1418_v51 }
 0x21e   :  { %v1428_v58 = vadd.f32 0.5, %v1420_v52 }
 0x21f   :  { %v1661_v62 = vpack.c.bf16 %v1427_v53, %v1426_v57 }
 0x220   :  { %v1662_v0 = vpack.c.bf16 %v1429_v55, %v1428_v58 }
 0x221   :  { %v1460_v7 = vrot.slane %v1661_v62, %v1459_v63 }
 0x222   :  { %v1467_v8 = vrot.slane %v1662_v0, %v1459_v63 }
 0x224   :  { %v1354_v26 = vpop.f32.mrf.mxu0  ;;  %v1395_v27 = vpop.f32.mrf.mxu1  ;;  %v1482_v15 = vcombine.low %v1460_v7, %v1467_v8 }
 0x225   :  { %v1355_v28 = vadd.f32 %v1354_v26, %v897_v22  ;;  %v1396_v29 = vadd.f32 %v1395_v27, %v905_v23 }
 0x226   :  { %v1356_v31 = vpop.f32.mrf.mxu0  ;;  %v1397_v32 = vpop.f32.mrf.mxu1  ;;  %v1490_v30 = vrot.slane %v1482_v15, %v1459_v63 }
 0x227   :  { %v1406_v33 = vmul.f32 0.5, %v1355_v28  ;;  %v1408_v34 = vmul.f32 0.5, %v1396_v29  ;;  %v1357_v35 = vadd.f32 %v1356_v31, %v901_v24  ;;  %v1398_v36 = vadd.f32 %v1397_v32, %v909_v25 }
 0x228   :  { %v1358_v37 = vpop.f32.mrf.mxu0  ;;  %v1399_v38 = vpop.f32.mrf.mxu1 }
 0x229   :  { %1840 = vtanh.f32 %v1406_v33  ;;  %v1407_v39 = vmul.f32 0.5, %v1357_v35  ;;  %v1409_v40 = vmul.f32 0.5, %v1398_v36 }
 0x22a   :  { %1842 = vtanh.f32 %v1408_v34  ;;  %v1359_v41 = vpop.f32.mrf.mxu0  ;;  %v1400_v42 = vpop.f32.mrf.mxu1 }
 0x22b   :  { %1844 = vtanh.f32 %v1407_v39 }
 0x22c   :  { %1846 = vtanh.f32 %v1409_v40 }
 0x236   :  { %v1841_v56 = vpop.eup %1840 }
 0x237   :  { %v1843_v59 = vpop.eup %1842  ;;  %v1422_v60 = vmul.f32 0.5, %v1841_v56 }
 0x238   :  { %v1845_v61 = vpop.eup %1844  ;;  %v1424_v1 = vmul.f32 0.5, %v1843_v59 }
 0x239   :  { %v1847_v2 = vpop.eup %1846  ;;  %v1423_v3 = vmul.f32 0.5, %v1845_v61  ;;  %v1430_v5 = vadd.f32 0.5, %v1422_v60 }
 0x23a   :  { %v1425_v4 = vmul.f32 0.5, %v1847_v2  ;;  %v1432_v9 = vadd.f32 0.5, %v1424_v1 }
 0x23b   :  { %v1431_v6 = vadd.f32 0.5, %v1423_v3 }
 0x23c   :  { %v1433_v10 = vadd.f32 0.5, %v1425_v4 }
 0x23d   :  { %v1663_v11 = vpack.c.bf16 %v1431_v6, %v1430_v5 }
 0x23e   :  { %v1664_v12 = vpack.c.bf16 %v1433_v10, %v1432_v9 }
 0x23f   :  { %v1474_v13 = vrot.slane %v1663_v11, %v1459_v63 }
 0x240   :  { %v1481_v14 = vrot.slane %v1664_v12, %v1459_v63 }
 0x242   :  { %v1483_v16 = vcombine.low %v1474_v13, %v1481_v14 }
 0x244   :  { %v1497_v17 = vrot.slane %v1483_v16, %v1459_v63 }
 0x246   :  { %v1498_v18 = vcombine.low %v1490_v30, %v1497_v17 }
 0x248   :  { %1500 = vst [vmem:[#allocation11] sm:$0xff] %v1498_v18 }
 0x249   :  { %1959 = shalt.err (!%p1956_p1)
}
 0x24a   :  { %1520 = dma.vmem_to_hbm [thread:$0]  %s1518_s24, 128, %s2078_s6, [#allocation12]  }
 0x24b   :  { %1974 = dma.done.wait [#allocation4], 16  }
 0x24c   :  { %1975 = vsyncadd [#allocation4], 4294967280 }
 0x24d   :  { %1976 = dma.done.wait [#allocation12], 128  }
 0x24e   :  { %1977 = vsyncadd [#allocation12], 4294967168 }
 0x24f   :  { %1527 = vsyncpa [#allocation3], 1 }
 0x250   :  { %1528 = vsyncpa [#allocation6], 1 }
 0x251   :  { %1529 = vsyncpa [#allocation9], 1 }
 0x252   :  { %1530 = vsyncpa [#allocation4], 1 }
 0x253   :  { %1531 = vsyncpa [#allocation12], 1 }

</bundles_post_ra>
